<compile_context>
chip_gen: v7x
topology: tpu7x:2x2x1
jax: 0.10.0
libtpu: 0.0.40
codegen_flags: <defaults>
</compile_context>

<pallas_src>
import jax
import jax.numpy as jnp
from jax.experimental import pallas as pl
from jax.experimental.pallas import tpu as pltpu

NUM_MODELS = 3


# ---------------------------------------------------------------------------
# Kernels
# ---------------------------------------------------------------------------
def _panel_kernel(x_ref, w_ref, b_ref, o_ref):
    """Full-K tile: out = x @ w_mean + b_mean (ensemble folded in wrapper).

    x_ref: (tm, D_in)   w_ref: (D_in, tn)   b_ref: (1, tn) f32   o_ref: (tm, tn)
    The weight panel's block index only depends on the outer grid axis, so it
    stays VMEM-resident across consecutive batch tiles (no re-DMA).
    """
    acc = jnp.dot(x_ref[...], w_ref[...], preferred_element_type=jnp.float32)
    o_ref[...] = (acc + b_ref[...]).astype(o_ref.dtype)


def _reduce_kernel(x_ref, w_ref, b_ref, o_ref, acc_ref):
    """K-tiled path with an f32 VMEM accumulator (reduction axis is last).

    x_ref: (tm, tk)   w_ref: (tk, tn)   b_ref: (1, tn) f32
    o_ref: (tm, tn)   acc_ref: (tm, tn) f32 scratch, resident across k.
    """
    k = pl.program_id(2)

    @pl.when(k == 0)
    def _():
        acc_ref[...] = jnp.zeros_like(acc_ref)

    acc_ref[...] += jnp.dot(x_ref[...], w_ref[...],
                            preferred_element_type=jnp.float32)

    @pl.when(k == pl.num_programs(2) - 1)
    def _():
        o_ref[...] = (acc_ref[...] + b_ref[...]).astype(o_ref.dtype)


# ---------------------------------------------------------------------------
# Tiling helpers
# ---------------------------------------------------------------------------
def _pick_tile(dim, target, multiple):
    """Largest tile <= target that divides dim and respects `multiple`.

    Falls back to the full dimension (always legal for BlockSpec) if no such
    divisor exists — never raises on awkward sizes like 384.
    """
    if dim <= target:
        return dim
    for cand in range(min(target, dim), multiple - 1, -1):
        if dim % cand == 0 and cand % multiple == 0:
            return cand
    return dim


# ---------------------------------------------------------------------------
# Wrapper
# ---------------------------------------------------------------------------
def ensemble_forward(x, w_stack, b_stack, *, compute_dtype=None,
                     tm=None, tn=None, tk=None):
    """x: (B, D_in); w_stack: (3, D_in, D_out); b_stack: (3, D_out)."""
    B, D_in = x.shape
    D_out = w_stack.shape[-1]
    out_dtype = x.dtype

    # Pre-fold the ensemble ONCE in the wrapper (exact for linear members),
    # in f32, *before* any low-precision cast:
    #   (A(x)+B(x)+C(x)) / 3 == x @ mean_i(W_i) + mean_i(b_i)
    w_mean = jnp.mean(w_stack.astype(jnp.float32), axis=0)        # (D_in, D_out)
    b_mean = jnp.mean(b_stack.astype(jnp.float32), axis=0)        # (D_out,)
    b_mean = b_mean.reshape(1, D_out)                              # f32 epilogue

    mm_dtype = compute_dtype if compute_dtype is not None else x.dtype
    x_mm = x.astype(mm_dtype)
    w_mm = w_mean.astype(mm_dtype)

    # Tile selection: largest valid divisors, lane axes in multiples of 128,
    # sublane axis in multiples of 8 (or the full dim).
    tm = tm or _pick_tile(B, 256, 8)
    tn = tn or _pick_tile(D_out, 512, 128)
    tk = tk or _pick_tile(D_in, 2048, 128)

    itemsize = jnp.dtype(mm_dtype).itemsize
    out_itemsize = jnp.dtype(out_dtype).itemsize

    def _vmem_limit(extra_bytes):
        est = (2 * tm * tk * itemsize          # x double-buffer
               + 2 * tk * tn * itemsize        # w double-buffer
               + 2 * 1 * tn * 4                # bias double-buffer
               + 2 * tm * tn * out_itemsize    # out double-buffer
               + extra_bytes)
        return int(min(max(2 * est, 32 * 1024 * 1024), 64 * 1024 * 1024))

    matmul_flops = 2 * B * D_in * D_out

    if tk == D_in:
        # ---- Panel-resident path: no reduction axis, batch innermost ------
        grid = (D_out // tn, B // tm)
        bytes_accessed = (x_mm.size * itemsize * (D_out // tn)   # x per panel
                          + w_mm.size * itemsize                 # w read once/panel
                          + b_mean.size * 4
                          + B * D_out * out_itemsize)
        return pl.pallas_call(
            _panel_kernel,
            out_shape=jax.ShapeDtypeStruct((B, D_out), out_dtype),
            grid_spec=pltpu.PrefetchScalarGridSpec(
                num_scalar_prefetch=0,
                grid=grid,
                in_specs=[
                    pl.BlockSpec((tm, tk), lambda j, i: (i, 0)),
                    pl.BlockSpec((tk, tn), lambda j, i: (0, j)),  # resident over i
                    pl.BlockSpec((1, tn), lambda j, i: (0, j)),
                ],
                out_specs=pl.BlockSpec((tm, tn), lambda j, i: (i, j)),
            ),
            compiler_params=pltpu.CompilerParams(
                dimension_semantics=("parallel", "parallel"),
                vmem_limit_bytes=_vmem_limit(0)),
            cost_estimate=pl.CostEstimate(
                flops=matmul_flops, transcendentals=0,
                bytes_accessed=int(bytes_accessed)),
        )(x_mm, w_mm, b_mean)

    # ---- K-tiled reduction path (large D_in) ------------------------------
    grid = (B // tm, D_out // tn, D_in // tk)
    bytes_accessed = (x_mm.size * itemsize * (D_out // tn)
                      + w_mm.size * itemsize * (B // tm)   # re-streamed per i
                      + b_mean.size * 4
                      + B * D_out * out_itemsize)
    return pl.pallas_call(
        _reduce_kernel,
        out_shape=jax.ShapeDtypeStruct((B, D_out), out_dtype),
        grid_spec=pltpu.PrefetchScalarGridSpec(
            num_scalar_prefetch=0,
            grid=grid,
            in_specs=[
                pl.BlockSpec((tm, tk), lambda i, j, k: (i, k)),
                pl.BlockSpec((tk, tn), lambda i, j, k: (k, j)),
                pl.BlockSpec((1, tn), lambda i, j, k: (0, j)),
            ],
            out_specs=pl.BlockSpec((tm, tn), lambda i, j, k: (i, j)),
            scratch_shapes=[pltpu.VMEM((tm, tn), jnp.float32)],
        ),
        compiler_params=pltpu.CompilerParams(
            dimension_semantics=("parallel", "parallel", "arbitrary"),
            vmem_limit_bytes=_vmem_limit(tm * tn * 4)),
        cost_estimate=pl.CostEstimate(
            flops=matmul_flops, transcendentals=0,
            bytes_accessed=int(bytes_accessed)),
    )(x_mm, w_mm, b_mean)


# ---------------------------------------------------------------------------
# Reference + demo
# ---------------------------------------------------------------------------
def reference_forward(x, w_stack, b_stack):
    outs = [x @ w_stack[i] + b_stack[i] for i in range(NUM_MODELS)]
    return (outs[0] + outs[1] + outs[2]) / 3.0


if __name__ == "__main__":
    key = jax.random.PRNGKey(0)
    kx, kw, kb = jax.random.split(key, 3)

    # Small, lane-dense demo shapes (D_in = D_out = 128 -> unmasked full-lane
    # stores, single weight panel).
    B, D_in, D_out = 8, 128, 128
    x = jax.random.normal(kx, (B, D_in), dtype=jnp.float32)
    w_stack = jax.random.normal(kw, (NUM_MODELS, D_in, D_out),
                                dtype=jnp.float32) * 0.1
    b_stack = jax.random.normal(kb, (NUM_MODELS, D_out),
                                dtype=jnp.float32) * 0.1
    ref = reference_forward(x, w_stack, b_stack)

    # 1) f32 operands, panel path (no reduction axis).
    out_f32 = jax.block_until_ready(ensemble_forward(x, w_stack, b_stack))
    assert out_f32.shape == (B, D_out)
    assert jnp.allclose(out_f32, ref, atol=1e-5, rtol=1e-5), "f32 panel mismatch"

    # 2) bf16 operands (production path), f32 accumulation / epilogue.
    out_bf16 = jax.block_until_ready(
        ensemble_forward(x, w_stack, b_stack, compute_dtype=jnp.bfloat16))
    assert out_bf16.dtype == jnp.float32
    assert jnp.allclose(out_bf16, ref, atol=2e-2, rtol=2e-2), "bf16 panel mismatch"

    # 3) K-tiled reduction path (forced by tk < D_in) at a slightly larger shape.
    B2, D_in2, D_out2 = 16, 256, 128
    x2 = jax.random.normal(kx, (B2, D_in2), dtype=jnp.float32)
    w2 = jax.random.normal(kw, (NUM_MODELS, D_in2, D_out2),
                           dtype=jnp.float32) * 0.1
    b2 = jax.random.normal(kb, (NUM_MODELS, D_out2), dtype=jnp.float32) * 0.1
    out_red = jax.block_until_ready(ensemble_forward(x2, w2, b2, tk=128))
    assert jnp.allclose(out_red, reference_forward(x2, w2, b2),
                        atol=1e-4, rtol=1e-4), "reduction path mismatch"

    print("KERNEL_OK")
</pallas_src>

<mosaic_0001>
module attributes {stable_mosaic.version = 11 : i64} {
  func.func @_panel_kernel(%arg0: i32, %arg1: i32, %arg2: memref<8x128xf32, #tpu.memory_space<vmem>>, %arg3: memref<128x128xf32, #tpu.memory_space<vmem>>, %arg4: memref<1x128xf32, #tpu.memory_space<vmem>>, %arg5: memref<8x128xf32, #tpu.memory_space<vmem>>) attributes {dimension_semantics = [#tpu.dimension_semantics<parallel>, #tpu.dimension_semantics<parallel>], iteration_bounds = array<i64: 1, 1>, scalar_prefetch = 0 : i64, scratch_operands = 0 : i64, tpu.core_type = #tpu.core_type<tc>, window_params = [{transform_indices = @transform_0, window_bounds = array<i64: 8, 128>}, {transform_indices = @transform_1, window_bounds = array<i64: 128, 128>}, {transform_indices = @transform_2, window_bounds = array<i64: 1, 128>}, {transform_indices = @transform_3, window_bounds = array<i64: 8, 128>}]} {
    %c0 = arith.constant 0 : index
    %c0_0 = arith.constant 0 : index
    %0 = vector.load %arg2[%c0, %c0_0] : memref<8x128xf32, #tpu.memory_space<vmem>>, vector<8x128xf32>
    %c0_1 = arith.constant 0 : index
    %c0_2 = arith.constant 0 : index
    %1 = vector.load %arg3[%c0_1, %c0_2] : memref<128x128xf32, #tpu.memory_space<vmem>>, vector<128x128xf32>
    %cst = arith.constant dense<0.000000e+00> : vector<8x128xf32>
    %2 = tpu.matmul %0, %1, %cst {dimension_numbers = #tpu.dot_dimension_numbers<[1], [0], [0], [1], [0, 0, 1, 1], [], []>} : vector<8x128xf32>, vector<128x128xf32>, vector<8x128xf32> -> vector<8x128xf32>
    %c0_3 = arith.constant 0 : index
    %c0_4 = arith.constant 0 : index
    %3 = vector.load %arg4[%c0_3, %c0_4] : memref<1x128xf32, #tpu.memory_space<vmem>>, vector<1x128xf32>
    %4 = vector.broadcast %3 : vector<1x128xf32> to vector<8x128xf32>
    %5 = arith.addf %2, %4 : vector<8x128xf32>
    %c0_5 = arith.constant 0 : index
    %c0_6 = arith.constant 0 : index
    %6 = vector.load %arg5[%c0_5, %c0_6] : memref<8x128xf32, #tpu.memory_space<vmem>>, vector<8x128xf32>
    tpu.vector_store %arg5[%c0_5, %c0_6], %5 {strides = array<i32>} : memref<8x128xf32, #tpu.memory_space<vmem>>, vector<8x128xf32>,
    return
  }
  func.func @transform_0(%arg0: i32, %arg1: i32) -> (i32, i32) {
    %c0_i32 = arith.constant 0 : i32
    %c0_i32_0 = arith.constant 0 : i32
    return %arg1, %c0_i32 : i32, i32
  }
  func.func @transform_1(%arg0: i32, %arg1: i32) -> (i32, i32) {
    %c0_i32 = arith.constant 0 : i32
    %c0_i32_0 = arith.constant 0 : i32
    return %c0_i32, %arg0 : i32, i32
  }
  func.func @transform_2(%arg0: i32, %arg1: i32) -> (i32, i32) {
    %c0_i32 = arith.constant 0 : i32
    %c0_i32_0 = arith.constant 0 : i32
    return %c0_i32, %arg0 : i32, i32
  }
  func.func @transform_3(%arg0: i32, %arg1: i32) -> (i32, i32) {
    %c0_i32 = arith.constant 0 : i32
    return %arg1, %arg0 : i32, i32
  }
}

</mosaic_0001>

<bundles_post_ra>
// kernel: tpu_custom_call.1
= control target key start
LH: loop header
LB: loop body
LE: loop exit
PB: predicated region body
PF: predicated region fallthrough
CT: control target
= control target key end

     0   :  { %8 = vsyncpa [#allocation3], 0  ;;  %s383_s0 = inlined_call_operand.hbm [shape: f32[8,128], index: 0, kind: input, shape index: {}]   ;;  %s384_s1 = inlined_call_operand.hbm [shape: f32[128,128], index: 1, kind: input, shape index: {}]   ;;  %s385_s2 = inlined_call_operand.vmem [shape: f32[1,128], index: 2, kind: input, shape index: {}]   ;;  %s386_s3 = inlined_call_operand.hbm [shape: f32[8,128], index: 3, kind: output, shape index: {}]  }
   0x1   :  { %9 = vsyncpa [#allocation6], 0 }
   0x2   :  { %10 = vsyncpa [#allocation4], 0  ;;  %s309_s12 = smov [#allocation2]   ;;  %s310_s14 = smov [#allocation5]  }
   0x3   :  { %s17_s13 = sshll.u32 %s309_s12, 4  ;;  %s26_s15 = sshll.u32 %s310_s14, 4  ;;  %s18_s13 = int_to_ptr.vmem [resolvable:$true] %s17_s13  ;;  %s337_s15 = int_to_ptr.vmem [resolvable:$true] %s26_s15 }
   0x4   :  { %s237_s18 = scalar_lea.hbm %s383_s0, 128 }
   0x5   :  { %p238_p0 = scmp.ne.s32.totalorder %s383_s0, %s237_s18  ;;  %p241_p1 = scmp.lt.u32.totalorder %s237_s18, %s383_s0 }
   0x7   :  { %p243_p2 = pnand %p241_p1, %p238_p0 }
   0x9   :  { %246 = shalt.err (!%p243_p2)
}
   0xa   :  { %s247_s23 = scalar_lea.vmem %s18_s13, 128  ;;  %p252_p4 = scmp.lt.s32.totalorder %s18_s13, %s18_s13 }
   0xb   :  { %p248_p3 = scmp.ne.s32.totalorder %s18_s13, %s247_s23  ;;  %p253_p5 = scmp.lt.s32.totalorder %s247_s23, %s247_s23 }
   0xd   :  { %p254_p6 = por %p253_p5, %p252_p4 }
   0xf   :  { %p255_p7 = pnand %p254_p6, %p248_p3 }
  0x11   :  { %258 = shalt.err (!%p255_p7)
}
  0x12   :  { %20 = dma.hbm_to_vmem [thread:$0]  %s383_s0, 128, %s18_s13, [#allocation3]  }
  0x13   :  { %s259_s28 = scalar_lea.hbm %s384_s1, 2048 }
  0x14   :  { %p260_p8 = scmp.ne.s32.totalorder %s384_s1, %s259_s28  ;;  %p263_p9 = scmp.lt.u32.totalorder %s259_s28, %s384_s1 }
  0x16   :  { %p265_p10 = pnand %p263_p9, %p260_p8 }
  0x18   :  { %268 = shalt.err (!%p265_p10)
}
  0x19   :  { %s269_s6 = scalar_lea.vmem %s337_s15, 2048  ;;  %p274_p12 = scmp.lt.s32.totalorder %s337_s15, %s337_s15 }
  0x1a   :  { %p270_p11 = scmp.ne.s32.totalorder %s337_s15, %s269_s6  ;;  %p275_p13 = scmp.lt.s32.totalorder %s269_s6, %s269_s6 }
  0x1c   :  { %p276_p0 = por %p275_p13, %p274_p12 }
  0x1e   :  { %p277_p1 = pnand %p276_p0, %p270_p11 }
  0x20   :  { %280 = shalt.err (!%p277_p1)
}
  0x21   :  { %s311_s0 = smov 128   ;;  %s312_s7 = smov 8  }
  0x22   :  { %32 = dma.hbm_to_vmem [thread:$0]  %s384_s1, 2048, %s337_s15, [#allocation6], %s311_s0, %s311_s0, %s312_s7  }
  0x23   :  { %303 = dma.done.wait [#allocation3], 128  }
  0x24   :  { %304 = vsyncadd [#allocation3], 4294967168 }
  0x25   :  { %305 = dma.done.wait [#allocation6], 2048  }
  0x26   :  { %306 = vsyncadd [#allocation6], 4294965248  ;;  %v313_v0 = vmov 0.0|0.0   ;;  %vm314_vm0 = vmmov 0   ;;  %v315_v1 = vmov 0.0   ;;  %v42_v2 = vld [vmem:[#allocation5] sm:$0xff] }
  0x27   :  { %205 = vmatprep.subr.bf16.mxu0 %v313_v0  ;;  %202 = vmatprep.mubr.msk.f32.mxu0 %vm314_vm0, %v315_v1  ;;  %v43_v3 = vld [vmem:[#allocation5 + $0x8] sm:$0xff]  ;;  %v44_v4 = vld [vmem:[#allocation5 + $0x10] sm:$0xff]  ;;  %v45_v6 = vld [vmem:[#allocation5 + $0x18] sm:$0xff]  ;;  %s316_s11 = smov [#allocation7]  }
  0x28   :  { %v206_v5 = vpack.c.bf16 %v43_v3, %v42_v2  ;;  %v209_v7 = vpack.c.bf16 %v45_v6, %v44_v4  ;;  %v46_v8 = vld [vmem:[#allocation5 + $0x20] sm:$0xff]  ;;  %v47_v9 = vld [vmem:[#allocation5 + $0x28] sm:$0xff]  ;;  %v48_v11 = vld [vmem:[#allocation5 + $0x30] sm:$0xff]  ;;  %s142_s12 = sshll.u32 %s316_s11, 4  ;;  %s143_s12 = int_to_ptr.vmem [resolvable:$true] %s142_s12 }
  0x29   :  { %v212_v10 = vpack.c.bf16 %v47_v9, %v46_v8  ;;  %v49_v12 = vld [vmem:[#allocation5 + $0x38] sm:$0xff]  ;;  %v50_v14 = vld [vmem:[#allocation5 + $0x40] sm:$0xff]  ;;  %v51_v15 = vld [vmem:[#allocation5 + $0x48] sm:$0xff]  ;;  %s281_s13 = scalar_lea.vmem %s143_s12, 128  ;;  %p286_p3 = scmp.lt.s32.totalorder %s143_s12, %s143_s12 }
  0x2a   :  { %207 = vmatpush3.bf16.msra.mxu0 %v206_v5  ;;  %v215_v13 = vpack.c.bf16 %v49_v12, %v48_v11  ;;  %v218_v16 = vpack.c.bf16 %v51_v15, %v50_v14  ;;  %v52_v17 = vld [vmem:[#allocation5 + $0x50] sm:$0xff]  ;;  %v53_v18 = vld [vmem:[#allocation5 + $0x58] sm:$0xff]  ;;  %v54_v20 = vld [vmem:[#allocation5 + $0x60] sm:$0xff]  ;;  %p282_p2 = scmp.ne.s32.totalorder %s143_s12, %s281_s13  ;;  %p287_p4 = scmp.lt.s32.totalorder %s281_s13, %s281_s13 }
  0x2b   :  { %208 = vmatprep.subr.bf16.mxu0 %v313_v0  ;;  %v221_v19 = vpack.c.bf16 %v53_v18, %v52_v17  ;;  %v55_v21 = vld [vmem:[#allocation5 + $0x68] sm:$0xff]  ;;  %v56_v23 = vld [vmem:[#allocation5 + $0x70] sm:$0xff]  ;;  %v57_v24 = vld [vmem:[#allocation5 + $0x78] sm:$0xff] }
  0x2c   :  { %v224_v22 = vpack.c.bf16 %v55_v21, %v54_v20  ;;  %v227_v25 = vpack.c.bf16 %v57_v24, %v56_v23  ;;  %v41_v26 = vld [vmem:[#allocation2] sm:$0xff]  ;;  %p288_p5 = por %p287_p4, %p286_p3 }
  0x2d   :  { %v152_v27 = vld [vmem:[%s385_s2] ss:$0 sm:$0xff] }
  0x2e   :  { %210 = vmatpush3.bf16.msra.mxu0 %v209_v7  ;;  %p289_p6 = pnand %p288_p5, %p282_p2 }
  0x2f   :  { %211 = vmatprep.subr.bf16.mxu0 %v313_v0 }
  0x32   :  { %213 = vmatpush3.bf16.msra.mxu0 %v212_v10 }
  0x33   :  { %214 = vmatprep.subr.bf16.mxu0 %v313_v0 }
  0x36   :  { %216 = vmatpush3.bf16.msra.mxu0 %v215_v13 }
  0x37   :  { %217 = vmatprep.subr.bf16.mxu0 %v313_v0 }
  0x3a   :  { %219 = vmatpush3.bf16.msra.mxu0 %v218_v16 }
  0x3b   :  { %220 = vmatprep.subr.bf16.mxu0 %v313_v0 }
  0x3e   :  { %222 = vmatpush3.bf16.msra.mxu0 %v221_v19 }
  0x3f   :  { %223 = vmatprep.subr.bf16.mxu0 %v313_v0 }
  0x42   :  { %225 = vmatpush3.bf16.msra.mxu0 %v224_v22 }
  0x43   :  { %226 = vmatprep.subr.bf16.mxu0 %v313_v0 }
  0x46   :  { %228 = vmatpush3.bf16.msra.mxu0 %v227_v25 }
  0x49   :  { %203 = vmatmul.mubr.f32.vlgmr.msra.gmra.mrb[0].mxu0 %v41_v26 }
 0x11c   :  { %v131_v28 = vpop.f32.mrb[0].mxu0 }
 0x11d   :  { %v132_v29 = vadd.f32 %v152_v27, %v131_v28  ;;  %v204_v30 = vpop.f32.mrb[1].mxu0 }
 0x11f   :  { %135 = vst [vmem:[#allocation7] sm:$0xff] %v132_v29 }
 0x120   :  { %292 = shalt.err (!%p289_p6)
}
 0x121   :  { %s293_s16 = scalar_lea.hbm %s386_s3, 128 }
 0x122   :  { %p294_p7 = scmp.ne.s32.totalorder %s386_s3, %s293_s16  ;;  %p297_p8 = scmp.lt.u32.totalorder %s293_s16, %s386_s3 }
 0x124   :  { %p299_p9 = pnand %p297_p8, %p294_p7 }
 0x126   :  { %302 = shalt.err (!%p299_p9)
}
 0x127   :  { %145 = dma.vmem_to_hbm [thread:$0]  %s143_s12, 128, %s386_s3, [#allocation4]  }
 0x128   :  { %307 = dma.done.wait [#allocation4], 128  }
 0x129   :  { %308 = vsyncadd [#allocation4], 4294967168 }
 0x12a   :  { %149 = vsyncpa [#allocation3], 1 }
 0x12b   :  { %150 = vsyncpa [#allocation6], 1 }
 0x12c   :  { %151 = vsyncpa [#allocation4], 1 }

</bundles_post_ra>
